<compile_context>
chip_gen: v7x
topology: tpu7x:2x2x1
jax: 0.10.0
libtpu: 0.0.40
codegen_flags: <defaults>
</compile_context>

<pallas_src>
import math

import jax
import jax.numpy as jnp
from jax.experimental import pallas as pl
from jax.experimental.pallas import tpu as pltpu

# DenseNet121 architecture constants (torchvision).
GROWTH_RATE = 32
BN_SIZE = 4
BLOCK_CONFIG = (6, 12, 24, 16)
NUM_INIT_FEATURES = 64
BN_EPS = 1e-5

_LANE = 128
_SUBLANE = 8
_TILE_M = 512  # row tile for the matmul kernel


def _round_up(x, m):
    return (x + m - 1) // m * m


# ---------------------------------------------------------------------------
# Pallas kernels
# ---------------------------------------------------------------------------
def _matmul_bias_kernel(x_ref, w_ref, b_ref, o_ref):
    # (tile_m, K) @ (K, N) on the MXU, f32 accumulation.  Contraction is
    # expressed directly with dot_general (no transposed copy of W).
    acc = jax.lax.dot_general(
        x_ref[...], w_ref[...],
        dimension_numbers=(((1,), (0,)), ((), ())),
        preferred_element_type=jnp.float32)
    o_ref[...] = acc + b_ref[...]


@jax.jit
def _matmul_bias_call(x, w, b):
    m, k = x.shape
    _, n = w.shape
    tile_m = _TILE_M if m > _TILE_M else m
    return pl.pallas_call(
        _matmul_bias_kernel,
        out_shape=jax.ShapeDtypeStruct((m, n), jnp.float32),
        grid=(m // tile_m,),
        in_specs=[
            pl.BlockSpec((tile_m, k), lambda i: (i, 0)),
            pl.BlockSpec((k, n), lambda i: (0, 0)),
            pl.BlockSpec((1, n), lambda i: (0, 0)),
        ],
        out_specs=pl.BlockSpec((tile_m, n), lambda i: (i, 0)),
        compiler_params=pltpu.CompilerParams(
            dimension_semantics=("parallel",)),
    )(x, w, b)


def _bn_relu_kernel(x_ref, scale_ref, shift_ref, o_ref):
    o_ref[...] = jnp.maximum(x_ref[...] * scale_ref[...] + shift_ref[...], 0.0)


@jax.jit
def _bn_relu_call(x, scale, shift):
    m, c = x.shape
    return pl.pallas_call(
        _bn_relu_kernel,
        out_shape=jax.ShapeDtypeStruct((m, c), jnp.float32),
        grid=(),
        in_specs=[
            pl.BlockSpec((m, c), lambda: (0, 0)),
            pl.BlockSpec((1, c), lambda: (0, 0)),
            pl.BlockSpec((1, c), lambda: (0, 0)),
        ],
        out_specs=pl.BlockSpec((m, c), lambda: (0, 0)),
    )(x, scale, shift)


def _max_pool_kernel(p_ref, o_ref):
    acc = p_ref[0]
    for k in range(1, p_ref.shape[0]):
        acc = jnp.maximum(acc, p_ref[k])
    o_ref[...] = acc


def _avg_pool_kernel(p_ref, o_ref):
    acc = p_ref[0]
    for k in range(1, p_ref.shape[0]):
        acc = acc + p_ref[k]
    o_ref[...] = acc * (1.0 / p_ref.shape[0])


def _pool_call(patches, kernel_fn):
    kk, m, c = patches.shape
    return pl.pallas_call(
        kernel_fn,
        out_shape=jax.ShapeDtypeStruct((m, c), jnp.float32),
        grid=(),
        in_specs=[pl.BlockSpec((kk, m, c), lambda: (0, 0, 0))],
        out_specs=pl.BlockSpec((m, c), lambda: (0, 0)),
    )(patches)


@jax.jit
def _max_pool_call(patches):
    return _pool_call(patches, _max_pool_kernel)


@jax.jit
def _avg_pool_call(patches):
    return _pool_call(patches, _avg_pool_kernel)


# ---------------------------------------------------------------------------
# Layer wrappers (padding / im2col plumbing lives here; compute is in Pallas)
# ---------------------------------------------------------------------------
def matmul_bias(x, w, b=None):
    """y = x @ w + b via the Pallas MXU kernel, with lane-dense zero padding."""
    m, k = x.shape
    k2, n = w.shape
    assert k == k2
    if b is None:
        b = jnp.zeros((n,), jnp.float32)
    kp = _round_up(k, _LANE)
    np_ = _round_up(n, _LANE)
    mp = _round_up(m, _TILE_M) if m > _TILE_M else _round_up(m, _SUBLANE)
    xp = jnp.pad(x, ((0, mp - m), (0, kp - k)))
    wp = jnp.pad(w, ((0, kp - k), (0, np_ - n)))
    bp = jnp.pad(b.reshape(1, n), ((0, 0), (0, np_ - n)))
    return _matmul_bias_call(xp, wp, bp)[:m, :n]


def bn_relu(x, bn):
    """Fused inference-mode BatchNorm + ReLU on an NHWC tensor."""
    n, h, w, c = x.shape
    m = n * h * w
    mp = _round_up(m, _SUBLANE)
    cp = _round_up(c, _LANE)
    xp = jnp.pad(x.reshape(m, c), ((0, mp - m), (0, cp - c)))
    sp = jnp.pad(bn["scale"], ((0, 0), (0, cp - c)))
    hp = jnp.pad(bn["shift"], ((0, 0), (0, cp - c)))
    y = _bn_relu_call(xp, sp, hp)
    return y[:m, :c].reshape(n, h, w, c)


def _im2col(x, kh, kw, stride):
    """NHWC -> (N*oh*ow, kh*kw*C) patches via strided slicing."""
    n, h, w, c = x.shape
    oh = (h - kh) // stride + 1
    ow = (w - kw) // stride + 1
    cols = [x[:, i:i + stride * oh:stride, j:j + stride * ow:stride, :]
            for i in range(kh) for j in range(kw)]
    patches = jnp.stack(cols, axis=3)                # (N, oh, ow, kh*kw, C)
    return patches.reshape(n * oh * ow, kh * kw * c), oh, ow


def conv2d(x, w_hwio, b=None, *, stride=1, padding=0):
    """2D convolution (NHWC / HWIO) = im2col + Pallas matmul(+bias) kernel."""
    n, _, _, c = x.shape
    kh, kw, _, cout = w_hwio.shape
    if padding:
        x = jnp.pad(x, ((0, 0), (padding, padding), (padding, padding), (0, 0)))
    if kh == 1 and kw == 1 and stride == 1:
        oh, ow = x.shape[1], x.shape[2]
        patches = x.reshape(n * oh * ow, c)
    else:
        patches, oh, ow = _im2col(x, kh, kw, stride)
    y = matmul_bias(patches, w_hwio.reshape(kh * kw * c, cout), b)
    return y.reshape(n, oh, ow, cout)


def _pool_patches(x, k, stride, padding, pad_value):
    n, _, _, c = x.shape
    if padding:
        x = jnp.pad(x, ((0, 0), (padding, padding), (padding, padding), (0, 0)),
                    constant_values=pad_value)
    h, w = x.shape[1], x.shape[2]
    oh = (h - k) // stride + 1
    ow = (w - k) // stride + 1
    cols = [x[:, i:i + stride * oh:stride, j:j + stride * ow:stride, :]
            for i in range(k) for j in range(k)]
    patches = jnp.stack(cols, axis=0).reshape(k * k, n * oh * ow, c)
    return patches, (n, oh, ow, c)


def max_pool2d(x, k, stride, padding=0):
    patches, (n, oh, ow, c) = _pool_patches(x, k, stride, padding, -jnp.inf)
    return _max_pool_call(patches).reshape(n, oh, ow, c)


def avg_pool2d(x, k, stride, padding=0):
    patches, (n, oh, ow, c) = _pool_patches(x, k, stride, padding, 0.0)
    return _avg_pool_call(patches).reshape(n, oh, ow, c)


# ---------------------------------------------------------------------------
# DenseNet121 parameters (deterministic synthetic init) and forward pass
# ---------------------------------------------------------------------------
# TODO(synk): pretrained ImageNet weights cannot be loaded here (no file/network
# I/O); parameters use a deterministic He-style init from PRNGKey(0).
def _init_conv(key, kh, kw, cin, cout):
    std = math.sqrt(2.0 / (kh * kw * cin))
    return std * jax.random.normal(key, (kh, kw, cin, cout), jnp.float32)


def _init_bn(key, c):
    k1, k2, k3, k4 = jax.random.split(key, 4)
    gamma = 1.0 + 0.1 * jax.random.normal(k1, (c,), jnp.float32)
    beta = 0.1 * jax.random.normal(k2, (c,), jnp.float32)
    mean = 0.1 * jax.random.normal(k3, (c,), jnp.float32)
    var = 1.0 + 0.1 * jax.random.uniform(k4, (c,), jnp.float32)
    scale = gamma * jax.lax.rsqrt(var + BN_EPS)     # eval-mode BN folded to scale/shift
    shift = beta - mean * scale
    return {"scale": scale.reshape(1, c), "shift": shift.reshape(1, c)}


def _stem_hw(h, w):
    h, w = h - 1, w - 1                                   # conv_mapping 2x2, stride 1
    h, w = (h + 6 - 7) // 2 + 1, (w + 6 - 7) // 2 + 1     # conv0 7x7 s2 p3
    h, w = (h + 2 - 3) // 2 + 1, (w + 2 - 3) // 2 + 1     # pool0 3x3 s2 p1
    for _ in range(3):                                    # transition avg-pools
        h, w = h // 2, w // 2
    return h, w


def init_densenet121_params(key, nb_classes=16, image_hw=(64, 64)):
    keys = iter(jax.random.split(key, 1024))
    params = {
        "conv_map_w": _init_conv(next(keys), 2, 2, 1, 3),
        "conv_map_b": 0.01 * jax.random.normal(next(keys), (3,), jnp.float32),
        "conv0": _init_conv(next(keys), 7, 7, 3, NUM_INIT_FEATURES),
        "norm0": _init_bn(next(keys), NUM_INIT_FEATURES),
    }
    c = NUM_INIT_FEATURES
    blocks, transitions = [], []
    for bi, num_layers in enumerate(BLOCK_CONFIG):
        layers = []
        for _ in range(num_layers):
            layers.append({
                "norm1": _init_bn(next(keys), c),
                "conv1": _init_conv(next(keys), 1, 1, c, BN_SIZE * GROWTH_RATE),
                "norm2": _init_bn(next(keys), BN_SIZE * GROWTH_RATE),
                "conv2": _init_conv(next(keys), 3, 3, BN_SIZE * GROWTH_RATE, GROWTH_RATE),
            })
            c += GROWTH_RATE
        blocks.append(layers)
        if bi != len(BLOCK_CONFIG) - 1:
            transitions.append({
                "norm": _init_bn(next(keys), c),
                "conv": _init_conv(next(keys), 1, 1, c, c // 2),
            })
            c //= 2
    params["blocks"] = blocks
    params["transitions"] = transitions
    params["norm5"] = _init_bn(next(keys), c)

    fh, fw = _stem_hw(*image_hw)
    # TODO(synk): F.avg_pool2d(kernel_size=7) needs >=222px inputs after the stem;
    # for small demo images the pool window is clamped to min(7, H, W).
    k = min(7, fh, fw)
    flat = c * ((fh - k) // k + 1) * ((fw - k) // k + 1)
    # TODO(synk): the original hardcodes Linear(in_features * 2, nb_classes), which
    # only matches particular non-square image shapes; the classifier here is sized
    # to the actual flattened feature width.
    params["cls_w"] = math.sqrt(1.0 / flat) * jax.random.normal(
        next(keys), (flat, nb_classes), jnp.float32)
    params["cls_b"] = jnp.zeros((nb_classes,), jnp.float32)
    return params


def densenet121_forward(params, x_nchw):
    """DenseNet121.forward (two_dim_map=True): returns (N, nb_classes) logits."""
    x = jnp.transpose(x_nchw, (0, 2, 3, 1)).astype(jnp.float32)   # NCHW -> NHWC
    # self._conv_mapping: Conv2d(1, 3, kernel_size=(2, 2))
    x = conv2d(x, params["conv_map_w"], params["conv_map_b"])
    # densenet121 features: stem
    x = conv2d(x, params["conv0"], stride=2, padding=3)
    x = bn_relu(x, params["norm0"])
    x = max_pool2d(x, 3, 2, padding=1)
    # dense blocks + transitions
    for bi, block in enumerate(params["blocks"]):
        for layer in block:
            y = bn_relu(x, layer["norm1"])
            y = conv2d(y, layer["conv1"])                 # 1x1, C -> 128
            y = bn_relu(y, layer["norm2"])
            y = conv2d(y, layer["conv2"], padding=1)      # 3x3, 128 -> 32
            x = jnp.concatenate([x, y], axis=-1)
        if bi < len(params["transitions"]):
            t = params["transitions"][bi]
            x = bn_relu(x, t["norm"])
            x = conv2d(x, t["conv"])                      # 1x1, C -> C//2
            x = avg_pool2d(x, 2, 2)
    # norm5 followed by the explicit F.relu in forward()
    x = bn_relu(x, params["norm5"])
    # F.avg_pool2d(x, kernel_size=7).view(N, -1)
    k = min(7, x.shape[1], x.shape[2])
    x = avg_pool2d(x, k, k)
    x = x.reshape(x.shape[0], -1)
    # self._classifier
    return matmul_bias(x, params["cls_w"], params["cls_b"])


# ---------------------------------------------------------------------------
# Self-check + demo run
# ---------------------------------------------------------------------------
def _self_check():
    """Check each Pallas kernel wrapper against a pure-XLA reference."""
    k1, k2, k3, k4, k5, k6 = jax.random.split(jax.random.PRNGKey(0), 6)

    # matmul + bias
    x = jax.random.normal(k1, (13, 70), jnp.float32)
    w = jax.random.normal(k2, (70, 37), jnp.float32)
    b = jax.random.normal(k3, (37,), jnp.float32)
    ref = jnp.dot(x, w, precision=jax.lax.Precision.HIGHEST) + b
    assert jnp.allclose(matmul_bias(x, w, b), ref, atol=2e-3, rtol=2e-3)

    # conv2d (3x3, stride 2, padding 1)
    xc = jax.random.normal(k4, (2, 9, 9, 5), jnp.float32)
    wc = 0.3 * jax.random.normal(k5, (3, 3, 5, 7), jnp.float32)
    ref = jax.lax.conv_general_dilated(
        xc, wc, window_strides=(2, 2), padding=((1, 1), (1, 1)),
        dimension_numbers=("NHWC", "HWIO", "NHWC"),
        precision=jax.lax.Precision.HIGHEST)
    assert jnp.allclose(conv2d(xc, wc, stride=2, padding=1), ref, atol=2e-3, rtol=2e-3)

    # fused eval-BN + ReLU
    bn = _init_bn(k6, 5)
    ref = jnp.maximum(xc * bn["scale"].reshape(1, 1, 1, 5)
                      + bn["shift"].reshape(1, 1, 1, 5), 0.0)
    assert jnp.allclose(bn_relu(xc, bn), ref, atol=1e-5, rtol=1e-5)

    # pooling
    ref = jax.lax.reduce_window(xc, -jnp.inf, jax.lax.max,
                                (1, 3, 3, 1), (1, 2, 2, 1),
                                ((0, 0), (1, 1), (1, 1), (0, 0)))
    assert jnp.allclose(max_pool2d(xc, 3, 2, padding=1), ref, atol=1e-5, rtol=1e-5)
    ref = jax.lax.reduce_window(xc, 0.0, jax.lax.add,
                                (1, 2, 2, 1), (1, 2, 2, 1),
                                ((0, 0), (0, 0), (0, 0), (0, 0))) / 4.0
    assert jnp.allclose(avg_pool2d(xc, 2, 2), ref, atol=1e-5, rtol=1e-5)


if __name__ == "__main__":
    _self_check()

    nb_classes = 16
    image_hw = (64, 64)   # small demo resolution (module default is 512x512)
    params = init_densenet121_params(jax.random.PRNGKey(0),
                                     nb_classes=nb_classes, image_hw=image_hw)
    x = jax.random.normal(jax.random.PRNGKey(0), (2, 1) + image_hw, jnp.float32)

    logits = densenet121_forward(params, x)
    logits = jax.block_until_ready(logits)

    assert logits.shape == (2, nb_classes)
    assert bool(jnp.all(jnp.isfinite(logits)))
    # TODO(synk): predict()/softmax and save/load helpers are not part of forward().
    print("KERNEL_OK")
</pallas_src>

<mosaic_0001>
module attributes {stable_mosaic.version = 11 : i64} {
  func.func @_matmul_bias_kernel(%arg0: i32, %arg1: memref<16x128xf32, #tpu.memory_space<vmem>>, %arg2: memref<128x128xf32, #tpu.memory_space<vmem>>, %arg3: memref<1x128xf32, #tpu.memory_space<vmem>>, %arg4: memref<16x128xf32, #tpu.memory_space<vmem>>) attributes {dimension_semantics = [#tpu.dimension_semantics<parallel>], iteration_bounds = array<i64: 1>, scalar_prefetch = 0 : i64, scratch_operands = 0 : i64, tpu.core_type = #tpu.core_type<tc>, window_params = [{transform_indices = @transform_0, window_bounds = array<i64: 16, 128>}, {pipeline_mode = #tpu.pipeline_mode<synchronous>, transform_indices = @transform_1, window_bounds = array<i64: 128, 128>}, {pipeline_mode = #tpu.pipeline_mode<synchronous>, transform_indices = @transform_2, window_bounds = array<i64: 1, 128>}, {transform_indices = @transform_3, window_bounds = array<i64: 16, 128>}]} {
    %c0 = arith.constant 0 : index
    %c0_0 = arith.constant 0 : index
    %0 = vector.load %arg1[%c0, %c0_0] : memref<16x128xf32, #tpu.memory_space<vmem>>, vector<16x128xf32>
    %c0_1 = arith.constant 0 : index
    %c0_2 = arith.constant 0 : index
    %1 = vector.load %arg2[%c0_1, %c0_2] : memref<128x128xf32, #tpu.memory_space<vmem>>, vector<128x128xf32>
    %cst = arith.constant dense<0.000000e+00> : vector<16x128xf32>
    %2 = tpu.matmul %0, %1, %cst {dimension_numbers = #tpu.dot_dimension_numbers<[1], [0], [0], [1], [0, 0, 1, 1], [], []>} : vector<16x128xf32>, vector<128x128xf32>, vector<16x128xf32> -> vector<16x128xf32>
    %c0_3 = arith.constant 0 : index
    %c0_4 = arith.constant 0 : index
    %3 = vector.load %arg3[%c0_3, %c0_4] : memref<1x128xf32, #tpu.memory_space<vmem>>, vector<1x128xf32>
    %4 = vector.broadcast %3 : vector<1x128xf32> to vector<16x128xf32>
    %5 = arith.addf %2, %4 : vector<16x128xf32>
    %c0_5 = arith.constant 0 : index
    %c0_6 = arith.constant 0 : index
    %6 = vector.load %arg4[%c0_5, %c0_6] : memref<16x128xf32, #tpu.memory_space<vmem>>, vector<16x128xf32>
    tpu.vector_store %arg4[%c0_5, %c0_6], %5 {strides = array<i32>} : memref<16x128xf32, #tpu.memory_space<vmem>>, vector<16x128xf32>,
    return
  }
  func.func @transform_0(%arg0: i32) -> (i32, i32) {
    %c0_i32 = arith.constant 0 : i32
    %c0_i32_0 = arith.constant 0 : i32
    return %arg0, %c0_i32 : i32, i32
  }
  func.func @transform_1(%arg0: i32) -> (i32, i32) {
    %c0_i32 = arith.constant 0 : i32
    %c0_i32_0 = arith.constant 0 : i32
    %c0_i32_1 = arith.constant 0 : i32
    return %c0_i32, %c0_i32_0 : i32, i32
  }
  func.func @transform_2(%arg0: i32) -> (i32, i32) {
    %c0_i32 = arith.constant 0 : i32
    %c0_i32_0 = arith.constant 0 : i32
    %c0_i32_1 = arith.constant 0 : i32
    return %c0_i32, %c0_i32_0 : i32, i32
  }
  func.func @transform_3(%arg0: i32) -> (i32, i32) {
    %c0_i32 = arith.constant 0 : i32
    %c0_i32_0 = arith.constant 0 : i32
    return %arg0, %c0_i32 : i32, i32
  }
}

</mosaic_0001>

<bundles_post_ra>
// kernel: _matmul_bias_call.1
= control target key start
LH: loop header
LB: loop body
LE: loop exit
PB: predicated region body
PF: predicated region fallthrough
CT: control target
= control target key end

     0   :  { %8 = vsyncpa [#allocation3], 0  ;;  %s399_s0 = inlined_call_operand.hbm [shape: f32[16,128], index: 0, kind: input, shape index: {}]   ;;  %s400_s1 = inlined_call_operand.hbm [shape: f32[128,128], index: 1, kind: input, shape index: {}]   ;;  %s401_s2 = inlined_call_operand.vmem [shape: f32[1,128], index: 2, kind: input, shape index: {}]   ;;  %s402_s3 = inlined_call_operand.hbm [shape: f32[16,128], index: 3, kind: output, shape index: {}]  }
   0x1   :  { %9 = vsyncpa [#allocation6], 0 }
   0x2   :  { %10 = vsyncpa [#allocation4], 0  ;;  %s326_s12 = smov [#allocation2]   ;;  %s254_s16 = scalar_lea.hbm %s399_s0, 256 }
   0x3   :  { %s16_s13 = sshll.u32 %s326_s12, 4  ;;  %p255_p0 = scmp.ne.s32.totalorder %s399_s0, %s254_s16  ;;  %s17_s13 = int_to_ptr.vmem [resolvable:$true] %s16_s13 }
   0x4   :  { %p258_p1 = scmp.lt.u32.totalorder %s254_s16, %s399_s0 }
   0x6   :  { %p260_p2 = pnand %p258_p1, %p255_p0 }
   0x8   :  { %263 = shalt.err (!%p260_p2)
}
   0x9   :  { %s264_s21 = scalar_lea.vmem %s17_s13, 256  ;;  %p269_p4 = scmp.lt.s32.totalorder %s17_s13, %s17_s13 }
   0xa   :  { %p265_p3 = scmp.ne.s32.totalorder %s17_s13, %s264_s21  ;;  %p270_p5 = scmp.lt.s32.totalorder %s264_s21, %s264_s21 }
   0xc   :  { %p271_p6 = por %p270_p5, %p269_p4 }
   0xe   :  { %p272_p7 = pnand %p271_p6, %p265_p3 }
  0x10   :  { %275 = shalt.err (!%p272_p7)
}
  0x11   :  { %s327_s22 = smov 128   ;;  %s328_s23 = smov 8  }
  0x12   :  { %22 = dma.hbm_to_vmem [thread:$0]  %s399_s0, 256, %s17_s13, [#allocation3], %s327_s22, %s327_s22, %s328_s23  }
  0x13   :  { %s329_s26 = smov [#allocation5]   ;;  %s276_s30 = scalar_lea.hbm %s400_s1, 2048 }
  0x14   :  { %s28_s27 = sshll.u32 %s329_s26, 4  ;;  %p277_p8 = scmp.ne.s32.totalorder %s400_s1, %s276_s30  ;;  %s29_s27 = int_to_ptr.vmem [resolvable:$true] %s28_s27 }
  0x15   :  { %p280_p9 = scmp.lt.u32.totalorder %s276_s30, %s400_s1 }
  0x17   :  { %p282_p10 = pnand %p280_p9, %p277_p8 }
  0x19   :  { %285 = shalt.err (!%p282_p10)
}
  0x1a   :  { %s286_s8 = scalar_lea.vmem %s29_s27, 2048  ;;  %p291_p12 = scmp.lt.s32.totalorder %s29_s27, %s29_s27 }
  0x1b   :  { %p287_p11 = scmp.ne.s32.totalorder %s29_s27, %s286_s8  ;;  %p292_p13 = scmp.lt.s32.totalorder %s286_s8, %s286_s8 }
  0x1d   :  { %p293_p0 = por %p292_p13, %p291_p12 }
  0x1f   :  { %p294_p1 = pnand %p293_p0, %p287_p11 }
  0x21   :  { %297 = shalt.err (!%p294_p1)
}
  0x22   :  { %34 = dma.hbm_to_vmem [thread:$0]  %s400_s1, 2048, %s29_s27, [#allocation6], %s327_s22, %s327_s22, %s328_s23  }
  0x23   :  { %320 = dma.done.wait [#allocation3], 256  }
  0x24   :  { %321 = vsyncadd [#allocation3], 4294967040 }
  0x25   :  { %322 = dma.done.wait [#allocation6], 2048  }
  0x26   :  { %323 = vsyncadd [#allocation6], 4294965248  ;;  %v45_v0 = vld [vmem:[#allocation5] sm:$0xff]  ;;  %v46_v1 = vld [vmem:[#allocation5 + $0x8] sm:$0xff]  ;;  %s330_s11 = smov [#allocation7]  }
  0x27   :  { %v47_v2 = vld [vmem:[#allocation5 + $0x10] sm:$0xff]  ;;  %v217_v3 = vpack.c.bf16 %v46_v1, %v45_v0  ;;  %v48_v4 = vld [vmem:[#allocation5 + $0x18] sm:$0xff]  ;;  %v49_v6 = vld [vmem:[#allocation5 + $0x20] sm:$0xff]  ;;  %s150_s12 = sshll.u32 %s330_s11, 4  ;;  %s151_s12 = int_to_ptr.vmem [resolvable:$true] %s150_s12 }
  0x28   :  { %v221_v5 = vpack.c.bf16 %v48_v4, %v47_v2  ;;  %v50_v7 = vld [vmem:[#allocation5 + $0x28] sm:$0xff]  ;;  %v43_v9 = vld [vmem:[#allocation2] sm:$0xff]  ;;  %v52_v11 = vld [vmem:[#allocation5 + $0x38] sm:$0xff]  ;;  %s298_s13 = scalar_lea.vmem %s151_s12, 256  ;;  %p303_p3 = scmp.lt.s32.totalorder %s151_s12, %s151_s12 }
  0x29   :  { %218 = vmatprep.subr.bf16.mxu0 %v217_v3  ;;  %v225_v8 = vpack.c.bf16 %v50_v7, %v49_v6  ;;  %v51_v10 = vld [vmem:[#allocation5 + $0x30] sm:$0xff]  ;;  %214 = vmatprep.mubr.f32.mxu0 %v43_v9  ;;  %v53_v13 = vld [vmem:[#allocation5 + $0x40] sm:$0xff]  ;;  %v54_v14 = vld [vmem:[#allocation5 + $0x48] sm:$0xff]  ;;  %p299_p2 = scmp.ne.s32.totalorder %s151_s12, %s298_s13  ;;  %p304_p4 = scmp.lt.s32.totalorder %s298_s13, %s298_s13 }
  0x2a   :  { %220 = vmatpush3.bf16.msra.mxu0 %v217_v3  ;;  %v229_v12 = vpack.c.bf16 %v52_v11, %v51_v10  ;;  %v233_v15 = vpack.c.bf16 %v54_v14, %v53_v13  ;;  %v55_v16 = vld [vmem:[#allocation5 + $0x50] sm:$0xff]  ;;  %v56_v17 = vld [vmem:[#allocation5 + $0x58] sm:$0xff]  ;;  %v57_v19 = vld [vmem:[#allocation5 + $0x60] sm:$0xff] }
  0x2b   :  { %222 = vmatprep.subr.bf16.mxu0 %v221_v5  ;;  %v237_v18 = vpack.c.bf16 %v56_v17, %v55_v16  ;;  %v58_v20 = vld [vmem:[#allocation5 + $0x68] sm:$0xff]  ;;  %v59_v22 = vld [vmem:[#allocation5 + $0x70] sm:$0xff]  ;;  %v60_v23 = vld [vmem:[#allocation5 + $0x78] sm:$0xff]  ;;  %p305_p5 = por %p304_p4, %p303_p3 }
  0x2c   :  { %v241_v21 = vpack.c.bf16 %v58_v20, %v57_v19  ;;  %v245_v24 = vpack.c.bf16 %v60_v23, %v59_v22  ;;  %v44_v25 = vld [vmem:[#allocation2 + $0x8] sm:$0xff]  ;;  %v163_v26 = vld [vmem:[%s401_s2] ss:$0 sm:$0xff] }
  0x2d   :  { %p306_p6 = pnand %p305_p5, %p299_p2 }
  0x2e   :  { %224 = vmatpush3.bf16.msra.mxu0 %v221_v5 }
  0x2f   :  { %226 = vmatprep.subr.bf16.mxu0 %v225_v8 }
  0x32   :  { %228 = vmatpush3.bf16.msra.mxu0 %v225_v8 }
  0x33   :  { %230 = vmatprep.subr.bf16.mxu0 %v229_v12 }
  0x36   :  { %232 = vmatpush3.bf16.msra.mxu0 %v229_v12 }
  0x37   :  { %234 = vmatprep.subr.bf16.mxu0 %v233_v15 }
  0x3a   :  { %236 = vmatpush3.bf16.msra.mxu0 %v233_v15 }
  0x3b   :  { %238 = vmatprep.subr.bf16.mxu0 %v237_v18 }
  0x3e   :  { %240 = vmatpush3.bf16.msra.mxu0 %v237_v18 }
  0x3f   :  { %242 = vmatprep.subr.bf16.mxu0 %v241_v21 }
  0x42   :  { %244 = vmatpush3.bf16.msra.mxu0 %v241_v21 }
  0x43   :  { %246 = vmatprep.subr.bf16.mxu0 %v245_v24 }
  0x46   :  { %248 = vmatpush3.bf16.msra.mxu0 %v245_v24 }
  0x49   :  { %215 = vmatmul.mubr.f32.vlgmr.msra.gmra.mrb[0].mxu0 %v44_v25 }
 0x11c   :  { %v216_v27 = vpop.f32.mrb[0].mxu0 }
 0x11d   :  { %v140_v28 = vadd.f32 %v216_v27, %v163_v26  ;;  %v134_v29 = vpop.f32.mrb[1].mxu0 }
 0x11e   :  { %v135_v30 = vadd.f32 %v163_v26, %v134_v29 }
 0x11f   :  { %144 = vst [vmem:[#allocation7 + $0x8] sm:$0xff] %v140_v28 }
 0x120   :  { %143 = vst [vmem:[#allocation7] sm:$0xff] %v135_v30 }
 0x121   :  { %309 = shalt.err (!%p306_p6)
}
 0x122   :  { %s310_s2 = scalar_lea.hbm %s402_s3, 256 }
 0x123   :  { %p311_p7 = scmp.ne.s32.totalorder %s402_s3, %s310_s2  ;;  %p314_p8 = scmp.lt.u32.totalorder %s310_s2, %s402_s3 }
 0x125   :  { %p316_p9 = pnand %p314_p8, %p311_p7 }
 0x127   :  { %319 = shalt.err (!%p316_p9)
}
 0x128   :  { %156 = dma.vmem_to_hbm [thread:$0]  %s151_s12, 256, %s402_s3, [#allocation4], %s327_s22, %s327_s22, %s328_s23  }
 0x129   :  { %324 = dma.done.wait [#allocation4], 256  }
 0x12a   :  { %325 = vsyncadd [#allocation4], 4294967040 }
 0x12b   :  { %160 = vsyncpa [#allocation3], 1 }
 0x12c   :  { %161 = vsyncpa [#allocation6], 1 }
 0x12d   :  { %162 = vsyncpa [#allocation4], 1 }

</bundles_post_ra>
